<compile_context>
chip_gen: v7x
topology: tpu7x:2x2x1
jax: 0.10.0
libtpu: 0.0.40
codegen_flags: <defaults>
</compile_context>

<pallas_src>
import functools

import jax
import jax.numpy as jnp
from jax import lax
from jax.experimental import pallas as pl
from jax.experimental.pallas import tpu as pltpu


def _upsample_conv_kernel(x_ref, w1_ref, w2_ref, o_ref, *, C, Lp, Wp, guard):
    """Fused depthwise-3x3 + pointwise-1x1 conv on one batch element.

    x_ref : (1, C, Lext)  zero-padded input, spatial flattened onto lanes
    w1_ref: (C, 9)        depthwise 3x3 taps, tap index k = dh*3 + dw
    w2_ref: (O4, C)       pointwise 1x1 weights
    o_ref : (1, O4, Lp)   pre-pixel-shuffle output in padded-flat coordinates
    """
    acc = jnp.zeros((C, Lp), jnp.float32)
    for dh in range(3):
        for dw in range(3):
            k = dh * 3 + dw
            # Static lane offset of this tap's window in the flat padded image.
            start = guard + (dh - 1) * Wp + (dw - 1)
            win = x_ref[0, :, start:start + Lp].astype(jnp.float32)   # (C, Lp)
            tap = w1_ref[:, k:k + 1].astype(jnp.float32)              # (C, 1)
            acc = acc + tap * win                                     # VPU FMA
    w2 = w2_ref[...].astype(jnp.float32)                              # (O4, C)
    z = jnp.dot(w2, acc, preferred_element_type=jnp.float32)          # MXU, (O4, Lp)
    o_ref[0, :, :] = z.astype(o_ref.dtype)


def upsample_forward(x, dw_weight, pw_weight):
    """x: (B, C, H, W) NCHW; dw_weight: (C, 1, 3, 3); pw_weight: (4*out_feat, C, 1, 1)."""
    B, C, H, W = x.shape
    O4 = pw_weight.shape[0]
    O = O4 // 4
    Hp, Wp = H + 2, W + 2
    Lp = Hp * Wp
    guard = Wp + 1            # max |flat shift| of a 3x3 tap
    Lext = Lp + 2 * guard

    # Zero-pad spatially (3x3, padding=1), flatten spatial onto lanes, and add a
    # small flat guard band so every statically shifted window read is in
    # bounds.  Row-crossing "contamination" only lands in the padding ring,
    # which is cropped below, so no masks are needed in the kernel.
    # TODO(synk): fold this padding into the kernel (masked edge taps) to save
    # the extra input-sized HBM copy.
    xp = jnp.pad(x, ((0, 0), (0, 0), (1, 1), (1, 1)))
    x_flat = xp.reshape(B, C, Lp)                          # free reshape
    x_ext = jnp.pad(x_flat, ((0, 0), (0, 0), (guard, guard)))

    w1 = dw_weight.reshape(C, 9)                           # (C, 3*3) taps
    w2 = pw_weight.reshape(O4, C)

    kernel = functools.partial(_upsample_conv_kernel, C=C, Lp=Lp, Wp=Wp, guard=guard)

    itemsize = jnp.dtype(x.dtype).itemsize
    block_bytes = itemsize * (C * Lext + O4 * Lp) + 4 * (C * 9 + O4 * C)
    vmem_limit = int(min(48 * 2**20, max(16 * 2**20, 6 * block_bytes)))

    z_flat = pl.pallas_call(
        kernel,
        out_shape=jax.ShapeDtypeStruct((B, O4, Lp), x.dtype),
        grid=(B,),
        in_specs=[
            pl.BlockSpec((1, C, Lext), lambda b: (b, 0, 0)),
            pl.BlockSpec((C, 9), lambda b: (0, 0)),       # resident across steps
            pl.BlockSpec((O4, C), lambda b: (0, 0)),      # resident across steps
        ],
        out_specs=pl.BlockSpec((1, O4, Lp), lambda b: (b, 0, 0)),
        compiler_params=pltpu.CompilerParams(
            dimension_semantics=("parallel",),
            vmem_limit_bytes=vmem_limit,
        ),
    )(x_ext, w1, w2)

    # Crop the padding ring and apply PixelShuffle(2).  XLA fuses the slice +
    # transpose + reshapes into a single copy of the output.
    # TODO(synk): fuse the PixelShuffle lane/sublane interleave into the kernel
    # output layout to remove this last output-sized copy.
    z = z_flat.reshape(B, O4, Hp, Wp)[:, :, 1:H + 1, 1:W + 1]     # (B, O4, H, W)
    out = (z.reshape(B, O, 2, 2, H, W)
            .transpose(0, 1, 4, 2, 5, 3)
            .reshape(B, O, 2 * H, 2 * W))
    return out


class UpsamplePallas:
    """JAX/Pallas equivalent of models/MUSE_net.py::Upsample (forward only)."""

    def __init__(self, input_feat, out_feat, key=None):
        if key is None:
            key = jax.random.PRNGKey(0)
        k1, k2 = jax.random.split(key)
        self.input_feat = input_feat
        self.out_feat = out_feat
        # Small deterministic random weights (exact Conv2d init is irrelevant
        # for the forward-pass check).
        self.dw_weight = 0.2 * jax.random.normal(k1, (input_feat, 1, 3, 3), jnp.float32)
        self.pw_weight = 0.2 * jax.random.normal(k2, (4 * out_feat, input_feat, 1, 1), jnp.float32)

    def __call__(self, x):
        return upsample_forward(x, self.dw_weight, self.pw_weight)


def _reference(x, dw_weight, pw_weight):
    """Pure-XLA reference: depthwise conv -> pointwise conv -> PixelShuffle(2)."""
    C = x.shape[1]
    y = lax.conv_general_dilated(
        x, dw_weight, window_strides=(1, 1), padding=((1, 1), (1, 1)),
        dimension_numbers=("NCHW", "OIHW", "NCHW"),
        feature_group_count=C, precision=lax.Precision.HIGHEST)
    z = lax.conv_general_dilated(
        y, pw_weight, window_strides=(1, 1), padding=((0, 0), (0, 0)),
        dimension_numbers=("NCHW", "OIHW", "NCHW"),
        precision=lax.Precision.HIGHEST)
    B, O4, H, W = z.shape
    O = O4 // 4
    z6 = z.reshape(B, O, 2, 2, H, W)
    out = jnp.zeros((B, O, 2 * H, 2 * W), z.dtype)
    for i in range(2):
        for j in range(2):
            out = out.at[:, :, i::2, j::2].set(z6[:, :, i, j])
    return out


if __name__ == "__main__":
    key = jax.random.PRNGKey(0)
    kx, km = jax.random.split(key)

    B, C_in, H, W = 2, 4, 16, 16
    out_feat = 2
    x = jax.random.normal(kx, (B, C_in, H, W), dtype=jnp.float32)

    mod = UpsamplePallas(C_in, out_feat, key=km)

    y = jax.jit(upsample_forward)(x, mod.dw_weight, mod.pw_weight)
    y = jax.block_until_ready(y)

    y_ref = jax.block_until_ready(_reference(x, mod.dw_weight, mod.pw_weight))

    assert y.shape == (B, out_feat, 2 * H, 2 * W), y.shape
    if jnp.allclose(y, y_ref, atol=2e-3, rtol=2e-3):
        print("KERNEL_OK")
    else:
        print("KERNEL_MISMATCH max_abs_err=",
              float(jnp.max(jnp.abs(y - y_ref))))
</pallas_src>

<mosaic_0001>
module attributes {stable_mosaic.version = 11 : i64} {
  func.func @_upsample_conv_kernel(%arg0: i32, %arg1: memref<1x4x362xf32, #tpu.memory_space<vmem>>, %arg2: memref<4x9xf32, #tpu.memory_space<vmem>>, %arg3: memref<8x4xf32, #tpu.memory_space<vmem>>, %arg4: memref<1x8x324xf32, #tpu.memory_space<vmem>>) attributes {dimension_semantics = [#tpu.dimension_semantics<parallel>], iteration_bounds = array<i64: 2>, scalar_prefetch = 0 : i64, scratch_operands = 0 : i64, tpu.core_type = #tpu.core_type<tc>, window_params = [{transform_indices = @transform_0, window_bounds = array<i64: 1, 4, 362>}, {pipeline_mode = #tpu.pipeline_mode<synchronous>, transform_indices = @transform_1, window_bounds = array<i64: 4, 9>}, {pipeline_mode = #tpu.pipeline_mode<synchronous>, transform_indices = @transform_2, window_bounds = array<i64: 8, 4>}, {transform_indices = @transform_3, window_bounds = array<i64: 1, 8, 324>}]} {
    %cst = arith.constant 0.000000e+00 : f32
    %0 = vector.broadcast %cst : f32 to vector<4x324xf32>
    %c0 = arith.constant 0 : index
    %c0_0 = arith.constant 0 : index
    %c0_1 = arith.constant 0 : index
    %1 = vector.load %arg1[%c0, %c0_0, %c0_1] : memref<1x4x362xf32, #tpu.memory_space<vmem>>, vector<1x4x324xf32>
    %2 = vector.shape_cast %1 : vector<1x4x324xf32> to vector<4x324xf32>
    %c0_2 = arith.constant 0 : index
    %c0_3 = arith.constant 0 : index
    %3 = vector.load %arg2[%c0_2, %c0_3] : memref<4x9xf32, #tpu.memory_space<vmem>>, vector<4x1xf32>
    %4 = vector.broadcast %3 : vector<4x1xf32> to vector<4x324xf32>
    %5 = arith.mulf %4, %2 : vector<4x324xf32>
    %6 = arith.addf %0, %5 : vector<4x324xf32>
    %c0_4 = arith.constant 0 : index
    %c0_5 = arith.constant 0 : index
    %c1 = arith.constant 1 : index
    %7 = vector.load %arg1[%c0_4, %c0_5, %c1] : memref<1x4x362xf32, #tpu.memory_space<vmem>>, vector<1x4x324xf32>
    %8 = vector.shape_cast %7 : vector<1x4x324xf32> to vector<4x324xf32>
    %c0_6 = arith.constant 0 : index
    %c1_7 = arith.constant 1 : index
    %9 = vector.load %arg2[%c0_6, %c1_7] : memref<4x9xf32, #tpu.memory_space<vmem>>, vector<4x1xf32>
    %10 = vector.broadcast %9 : vector<4x1xf32> to vector<4x324xf32>
    %11 = arith.mulf %10, %8 : vector<4x324xf32>
    %12 = arith.addf %6, %11 : vector<4x324xf32>
    %c0_8 = arith.constant 0 : index
    %c0_9 = arith.constant 0 : index
    %c2 = arith.constant 2 : index
    %13 = vector.load %arg1[%c0_8, %c0_9, %c2] : memref<1x4x362xf32, #tpu.memory_space<vmem>>, vector<1x4x324xf32>
    %14 = vector.shape_cast %13 : vector<1x4x324xf32> to vector<4x324xf32>
    %c0_10 = arith.constant 0 : index
    %c2_11 = arith.constant 2 : index
    %15 = vector.load %arg2[%c0_10, %c2_11] : memref<4x9xf32, #tpu.memory_space<vmem>>, vector<4x1xf32>
    %16 = vector.broadcast %15 : vector<4x1xf32> to vector<4x324xf32>
    %17 = arith.mulf %16, %14 : vector<4x324xf32>
    %18 = arith.addf %12, %17 : vector<4x324xf32>
    %c0_12 = arith.constant 0 : index
    %c0_13 = arith.constant 0 : index
    %c18 = arith.constant 18 : index
    %19 = vector.load %arg1[%c0_12, %c0_13, %c18] : memref<1x4x362xf32, #tpu.memory_space<vmem>>, vector<1x4x324xf32>
    %20 = vector.shape_cast %19 : vector<1x4x324xf32> to vector<4x324xf32>
    %c0_14 = arith.constant 0 : index
    %c3 = arith.constant 3 : index
    %21 = vector.load %arg2[%c0_14, %c3] : memref<4x9xf32, #tpu.memory_space<vmem>>, vector<4x1xf32>
    %22 = vector.broadcast %21 : vector<4x1xf32> to vector<4x324xf32>
    %23 = arith.mulf %22, %20 : vector<4x324xf32>
    %24 = arith.addf %18, %23 : vector<4x324xf32>
    %c0_15 = arith.constant 0 : index
    %c0_16 = arith.constant 0 : index
    %c19 = arith.constant 19 : index
    %25 = vector.load %arg1[%c0_15, %c0_16, %c19] : memref<1x4x362xf32, #tpu.memory_space<vmem>>, vector<1x4x324xf32>
    %26 = vector.shape_cast %25 : vector<1x4x324xf32> to vector<4x324xf32>
    %c0_17 = arith.constant 0 : index
    %c4 = arith.constant 4 : index
    %27 = vector.load %arg2[%c0_17, %c4] : memref<4x9xf32, #tpu.memory_space<vmem>>, vector<4x1xf32>
    %28 = vector.broadcast %27 : vector<4x1xf32> to vector<4x324xf32>
    %29 = arith.mulf %28, %26 : vector<4x324xf32>
    %30 = arith.addf %24, %29 : vector<4x324xf32>
    %c0_18 = arith.constant 0 : index
    %c0_19 = arith.constant 0 : index
    %c20 = arith.constant 20 : index
    %31 = vector.load %arg1[%c0_18, %c0_19, %c20] : memref<1x4x362xf32, #tpu.memory_space<vmem>>, vector<1x4x324xf32>
    %32 = vector.shape_cast %31 : vector<1x4x324xf32> to vector<4x324xf32>
    %c0_20 = arith.constant 0 : index
    %c5 = arith.constant 5 : index
    %33 = vector.load %arg2[%c0_20, %c5] : memref<4x9xf32, #tpu.memory_space<vmem>>, vector<4x1xf32>
    %34 = vector.broadcast %33 : vector<4x1xf32> to vector<4x324xf32>
    %35 = arith.mulf %34, %32 : vector<4x324xf32>
    %36 = arith.addf %30, %35 : vector<4x324xf32>
    %c0_21 = arith.constant 0 : index
    %c0_22 = arith.constant 0 : index
    %c36 = arith.constant 36 : index
    %37 = vector.load %arg1[%c0_21, %c0_22, %c36] : memref<1x4x362xf32, #tpu.memory_space<vmem>>, vector<1x4x324xf32>
    %38 = vector.shape_cast %37 : vector<1x4x324xf32> to vector<4x324xf32>
    %c0_23 = arith.constant 0 : index
    %c6 = arith.constant 6 : index
    %39 = vector.load %arg2[%c0_23, %c6] : memref<4x9xf32, #tpu.memory_space<vmem>>, vector<4x1xf32>
    %40 = vector.broadcast %39 : vector<4x1xf32> to vector<4x324xf32>
    %41 = arith.mulf %40, %38 : vector<4x324xf32>
    %42 = arith.addf %36, %41 : vector<4x324xf32>
    %c0_24 = arith.constant 0 : index
    %c0_25 = arith.constant 0 : index
    %c37 = arith.constant 37 : index
    %43 = vector.load %arg1[%c0_24, %c0_25, %c37] : memref<1x4x362xf32, #tpu.memory_space<vmem>>, vector<1x4x324xf32>
    %44 = vector.shape_cast %43 : vector<1x4x324xf32> to vector<4x324xf32>
    %c0_26 = arith.constant 0 : index
    %c7 = arith.constant 7 : index
    %45 = vector.load %arg2[%c0_26, %c7] : memref<4x9xf32, #tpu.memory_space<vmem>>, vector<4x1xf32>
    %46 = vector.broadcast %45 : vector<4x1xf32> to vector<4x324xf32>
    %47 = arith.mulf %46, %44 : vector<4x324xf32>
    %48 = arith.addf %42, %47 : vector<4x324xf32>
    %c0_27 = arith.constant 0 : index
    %c0_28 = arith.constant 0 : index
    %c38 = arith.constant 38 : index
    %49 = vector.load %arg1[%c0_27, %c0_28, %c38] : memref<1x4x362xf32, #tpu.memory_space<vmem>>, vector<1x4x324xf32>
    %50 = vector.shape_cast %49 : vector<1x4x324xf32> to vector<4x324xf32>
    %c0_29 = arith.constant 0 : index
    %c8 = arith.constant 8 : index
    %51 = vector.load %arg2[%c0_29, %c8] : memref<4x9xf32, #tpu.memory_space<vmem>>, vector<4x1xf32>
    %52 = vector.broadcast %51 : vector<4x1xf32> to vector<4x324xf32>
    %53 = arith.mulf %52, %50 : vector<4x324xf32>
    %54 = arith.addf %48, %53 : vector<4x324xf32>
    %c0_30 = arith.constant 0 : index
    %c0_31 = arith.constant 0 : index
    %55 = vector.load %arg3[%c0_30, %c0_31] : memref<8x4xf32, #tpu.memory_space<vmem>>, vector<8x4xf32>
    %cst_32 = arith.constant dense<0.000000e+00> : vector<8x324xf32>
    %56 = tpu.matmul %55, %54, %cst_32 {dimension_numbers = #tpu.dot_dimension_numbers<[1], [0], [0], [1], [0, 0, 1, 1], [], []>} : vector<8x4xf32>, vector<4x324xf32>, vector<8x324xf32> -> vector<8x324xf32>
    %c0_33 = arith.constant 0 : index
    %c0_34 = arith.constant 0 : index
    %c0_35 = arith.constant 0 : index
    %57 = vector.load %arg4[%c0_33, %c0_34, %c0_35] : memref<1x8x324xf32, #tpu.memory_space<vmem>>, vector<1x8x324xf32>
    %58 = vector.shape_cast %57 : vector<1x8x324xf32> to vector<8x324xf32>
    %59 = vector.shape_cast %56 : vector<8x324xf32> to vector<1x8x324xf32>
    tpu.vector_store %arg4[%c0_33, %c0_34, %c0_35], %59 {strides = array<i32>} : memref<1x8x324xf32, #tpu.memory_space<vmem>>, vector<1x8x324xf32>,
    return
  }
  func.func @transform_0(%arg0: i32) -> (i32, i32, i32) {
    %c0_i32 = arith.constant 0 : i32
    %c0_i32_0 = arith.constant 0 : i32
    %c0_i32_1 = arith.constant 0 : i32
    return %arg0, %c0_i32, %c0_i32_0 : i32, i32, i32
  }
  func.func @transform_1(%arg0: i32) -> (i32, i32) {
    %c0_i32 = arith.constant 0 : i32
    %c0_i32_0 = arith.constant 0 : i32
    %c0_i32_1 = arith.constant 0 : i32
    return %c0_i32, %c0_i32_0 : i32, i32
  }
  func.func @transform_2(%arg0: i32) -> (i32, i32) {
    %c0_i32 = arith.constant 0 : i32
    %c0_i32_0 = arith.constant 0 : i32
    %c0_i32_1 = arith.constant 0 : i32
    return %c0_i32, %c0_i32_0 : i32, i32
  }
  func.func @transform_3(%arg0: i32) -> (i32, i32, i32) {
    %c0_i32 = arith.constant 0 : i32
    %c0_i32_0 = arith.constant 0 : i32
    %c0_i32_1 = arith.constant 0 : i32
    return %arg0, %c0_i32, %c0_i32_0 : i32, i32, i32
  }
}

</mosaic_0001>

<bundles_post_ra>
// kernel: upsample_forward.1
= control target key start
LH: loop header
LB: loop body
LE: loop exit
PB: predicated region body
PF: predicated region fallthrough
CT: control target
= control target key end

     0   :  { %s743_s12 = smov 0   ;;  %s872_s0 = inlined_call_operand.vmem [shape: f32[2,4,362], index: 0, kind: input, shape index: {}]   ;;  %s873_s1 = inlined_call_operand.vmem [shape: f32[4,9], index: 1, kind: input, shape index: {}]   ;;  %s874_s2 = inlined_call_operand.vmem [shape: f32[8,4], index: 2, kind: input, shape index: {}]   ;;  %s875_s3 = inlined_call_operand.vmem [shape: f32[2,8,324], index: 3, kind: output, shape index: {}]  }
   0x1 LB: > { %s635_s13 = sadd.s32 4294967295, %s702_s12   ;;  %p639_p0 = scmp.ge.s32.totalorder %s702_s12, 1  ;;  %s702_s12 = sphi %s743_s12, %s13_s12  }
   0x2   : > { %p137_p1 = scmp.lt.s32.totalorder %s702_s12, 3 }
   0x4   : > { %p138_p2 = pnand %p639_p0, %p137_p1 }
   0x5   : > { %v219_v0 = vld [vmem:[%s873_s1] sm:$0xf] (!%p138_p2)  ;;  %v704_v2 = vmov (!%p138_p2), 2   ;;  %v705_v3 = vmov (!%p138_p2), 0   ;;  %p161_p3 = scmp.lt.s32.totalorder (!%p138_p2), %s635_s13, 1  ;;  %v706_v6 = vmov (!%p138_p2), 3  }
   0x6   : > { %141 = sbr.rel (%p138_p2) target bundleno = 424 (0x1a8), region = 32  ;;  %v173_v1 = vld [vmem:[%s873_s1] sm:$0xf] (!%p138_p2)  ;;  %687 = vset.pattern.permute.xlu1 (!%p138_p2), %v704_v2  ;;  %685 = vset.pattern.permute.xlu0 (!%p138_p2), %v705_v3  ;;  %v707_v7 = vmov (!%p138_p2), 1   ;;  %v708_v11 = vmov (!%p138_p2), 4   ;;  %s709_s26 = smov (!%p138_p2), 127  }
   0x7   : > { %222 = vperm.xlu1 (!%p138_p2), %687, %v219_v0   ;;  %176 = vperm.xlu0 (!%p138_p2), %685, %v173_v1   ;;  %v248_v4 = vld [vmem:[%s873_s1] sm:$0xf] (!%p138_p2)  ;;  %v710_v12 = vmov (!%p138_p2), 8   ;;  %s711_s29 = smov (!%p138_p2), 126   ;;  %v712_v15 = vmov (!%p138_p2), 5   ;;  %s713_s5 = smov (!%p138_p2), 110  }
   0x8   : > { %v190_v5 = vld [vmem:[%s873_s1] sm:$0xf] (!%p138_p2)  ;;  %v714_v18 = vmov (!%p138_p2), 6   ;;  %s715_s8 = smov (!%p138_p2), 109   ;;  %v716_v21 = vmov (!%p138_p2), 7   ;;  %s717_s11 = smov (!%p138_p2), 108  }
   0x9   : > { %v277_v13 = vld [vmem:[%s873_s1] sm:$0xf] (!%p138_p2)  ;;  %s718_s16 = smov (!%p138_p2), 92   ;;  %s719_s17 = smov (!%p138_p2), 91   ;;  %v721_v28 = vmov (!%p138_p2), 0.0   ;;  %vm722_vm0 = vmmov (!%p138_p2), 0  }
   0xa   : > { %v306_v16 = vld [vmem:[%s873_s1] sm:$0xf] (!%p138_p2)  ;;  %s720_s18 = smov (!%p138_p2), 90   ;;  %651 = vmatprep.subr.mxu1 (!%p138_p2), %v721_v28  ;;  %499 = vmatprep.mubr.f32.mxu0 (!%p138_p2), %v721_v28  ;;  %vm205_vm1 = vcmask (!%p138_p2), 1039360   ;;  %vm234_vm2 = vcmask (!%p138_p2), 1031168   ;;  %vm263_vm3 = vcmask (!%p138_p2), 900096  }
   0xb   : > { %688 = vset.pattern.permute.xlu1 (!%p138_p2), %v706_v6  ;;  %686 = vset.pattern.permute.xlu0 (!%p138_p2), %v707_v7  ;;  %v335_v19 = vld [vmem:[%s873_s1] sm:$0xf] (!%p138_p2)  ;;  %vm292_vm4 = vcmask (!%p138_p2), 891904   ;;  %vm321_vm5 = vcmask (!%p138_p2), 883712   ;;  %vm350_vm6 = vcmask (!%p138_p2), 752640   ;;  %vm379_vm7 = vcmask (!%p138_p2), 744448  }
   0xc   : > { %251 = vperm.xlu1 (!%p138_p2), %688, %v248_v4   ;;  %193 = vperm.xlu0 (!%p138_p2), %686, %v190_v5   ;;  %v364_v22 = vld [vmem:[%s873_s1] sm:$0xf] (!%p138_p2)  ;;  %vm408_vm8 = vcmask (!%p138_p2), 736256   ;;  %vm425_vm9 = vcmask (!%p138_p2), 1043456   ;;  %vm421_vm10 = vcmask (!%p138_p2), 31744   ;;  %vm578_vm11 = vcmask (!%p138_p2), 556032  }
   0xd   : > { %s877_s13 = smov (!%p161_p3, %s635_s13), 1  ;;  %v393_v24 = vld [vmem:[%s873_s1] sm:$0xf]  ;;  %653 = vmatprep.mubr.msk.f32.mxu1 %vm722_vm0, %v721_v28 }
   0xe   : > { %s656_s22 = smul.u32 12, %s877_s13 }
   0xf   : > { %s657_s21 = smul.u32 24, %s877_s13 }
  0x10   : > { %s769_s25 = scalar_lea.vmem %s872_s0, %s656_s22  ;;  %689 = vset.pattern.permute.xlu1 %v708_v11  ;;  %694 = vset.pattern.permute.xlu0 %v710_v12 }
  0x11   : > { %v772_v8 = vld [vmem:[%s769_s25] sm:$0xff]  ;;  %v189_v9 = vld [vmem:[%s769_s25 + $0x8] sm:$0xf]  ;;  %s170_s24 = scalar_lea.vmem %s875_s3, %s657_s21 }
  0x12   : > { %v777_v10 = vcombine.high %v772_v8, %v772_v8  ;;  %203 = vrot.lane.b32.xlu0 %v189_v9, %s709_s26  ;;  %v218_v14 = vld [vmem:[%s769_s25 + $0x8] sm:$0xf] }
  0x13   : > { %v247_v17 = vld [vmem:[%s769_s25 + $0x8] sm:$0xf] }
  0x14   : > { %201 = vrot.lane.b32.xlu1 %v777_v10, %s709_s26  ;;  %v276_v20 = vld [vmem:[%s769_s25 + $0x8] sm:$0xf] }
  0x15   : > { %v305_v23 = vld [vmem:[%s769_s25 + $0x8] sm:$0xf] }
  0x16   : > { %199 = vrot.lane.b32.xlu0 %v772_v8, %s709_s26  ;;  %v334_v25 = vld [vmem:[%s769_s25 + $0x8] sm:$0xf] }
  0x17   : > { %v363_v26 = vld [vmem:[%s769_s25 + $0x8] sm:$0xf] }
  0x18   : > { %280 = vperm.xlu1 %689, %v277_v13   ;;  %v392_v27 = vld [vmem:[%s769_s25 + $0x8] sm:$0xf] }
  0x19   : > { %v172_v50 = vld [vmem:[%s769_s25 + $0x8] sm:$0xf] }
  0x1a   : > { %232 = vrot.lane.b32.xlu0 %v218_v14, %s711_s29 }
  0x1c   : > { %230 = vrot.lane.b32.xlu1 %v777_v10, %s711_s29 }
  0x1d   : > { %690 = vset.pattern.permute.xlu1 %v712_v15 }
  0x1e   : > { %228 = vrot.lane.b32.xlu0 %v772_v8, %s711_s29 }
  0x20   : > { %309 = vperm.xlu1 %690, %v306_v16  }
  0x22   : > { %261 = vrot.lane.b32.xlu0 %v247_v17, %s713_s5 }
  0x24   : > { %259 = vrot.lane.b32.xlu1 %v777_v10, %s713_s5 }
  0x25   : > { %691 = vset.pattern.permute.xlu1 %v714_v18 }
  0x26   : > { %257 = vrot.lane.b32.xlu0 %v772_v8, %s713_s5 }
  0x28   : > { %338 = vperm.xlu1 %691, %v335_v19  }
  0x2a   : > { %290 = vrot.lane.b32.xlu0 %v276_v20, %s715_s8 }
  0x2c   : > { %288 = vrot.lane.b32.xlu1 %v777_v10, %s715_s8 }
  0x2d   : > { %692 = vset.pattern.permute.xlu1 %v716_v21 }
  0x2e   : > { %286 = vrot.lane.b32.xlu0 %v772_v8, %s715_s8 }
  0x30   : > { %367 = vperm.xlu1 %692, %v364_v22  }
  0x32   : > { %319 = vrot.lane.b32.xlu0 %v305_v23, %s717_s11 }
  0x34   : > { %317 = vrot.lane.b32.xlu1 %v777_v10, %s717_s11 }
  0x35   : > { %693 = vset.pattern.permute.xlu1 %v710_v12 }
  0x36   : > { %315 = vrot.lane.b32.xlu0 %v772_v8, %s717_s11 }
  0x38   : > { %396 = vperm.xlu1 %693, %v393_v24  }
  0x3a   : > { %348 = vrot.lane.b32.xlu0 %v334_v25, %s718_s16 }
  0x3c   : > { %346 = vrot.lane.b32.xlu1 %v777_v10, %s718_s16 }
  0x3e   : > { %375 = vrot.lane.b32.xlu0 %v777_v10, %s719_s17 }
  0x40   : > { %344 = vrot.lane.b32.xlu1 %v772_v8, %s718_s16 }
  0x42   : > { %373 = vrot.lane.b32.xlu0 %v772_v8, %s719_s17 }
  0x44   : > { %377 = vrot.lane.b32.xlu1 %v363_v26, %s719_s17 }
  0x46   : > { %406 = vrot.lane.b32.xlu0 %v392_v27, %s720_s18 }
  0x48   : > { %404 = vrot.lane.b32.xlu1 %v777_v10, %s720_s18 }
  0x4c   : > { %402 = vrot.lane.b32.xlu1 %v772_v8, %s720_s18 }
  0x86   : > { %v223_v29 = vpop.permute.xlu1 %222  ;;  %v177_v30 = vpop.permute.xlu0 %176 }
  0x87   : > { %v184_v54 = vmul.f32 %v177_v30, %v172_v50  ;;  %v183_v61 = vmul.f32 %v777_v10, %v177_v30  ;;  %v182_v5 = vmul.f32 %v772_v8, %v177_v30 }
  0x8b   : > { %v252_v31 = vpop.permute.xlu1 %251  ;;  %v194_v32 = vpop.permute.xlu0 %193 }
  0x8f   : > { %v204_v33 = vpop.permute.xlu0 %203  ;;  %v202_v34 = vpop.permute.xlu1 %201 }
  0x90   : > { %v207_v52 = vsel %vm205_vm1, %v202_v34, %v204_v33  ;;  %v213_v53 = vmul.f32 %v204_v33, %v194_v32 }
  0x91   : > { %v212_v56 = vmul.f32 %v207_v52, %v194_v32 }
  0x92   : > { %v216_v62 = vadd.f32 %v213_v53, %v184_v54 }
  0x93   : > { %v200_v35 = vpop.permute.xlu0 %199  ;;  %v215_v6 = vadd.f32 %v212_v56, %v183_v61 }
  0x94   : > { %v206_v57 = vsel %vm205_vm1, %v200_v35, %v202_v34 }
  0x95   : > { %v211_v1 = vmul.f32 %v206_v57, %v194_v32 }
  0x97   : > { %v817_v36 = vpop.permute.xlu1 %280  ;;  %v233_v37 = vpop.permute.xlu0 %232  ;;  %v214_v15 = vadd.f32 %v211_v1, %v182_v5 }
  0x98   : > { %v242_v58 = vmul.f32 %v233_v37, %v223_v29 }
  0x9a   : > { %v245_v7 = vadd.f32 %v242_v58, %v216_v62 }
  0x9b   : > { %v231_v38 = vpop.permute.xlu1 %230  ;;  %v229_v39 = vpop.permute.xlu0 %228 }
  0x9c   : > { %v236_v59 = vsel %vm234_vm2, %v231_v38, %v233_v37  ;;  %v235_v63 = vsel %vm234_vm2, %v229_v39, %v231_v38 }
  0x9d   : > { %v241_v2 = vmul.f32 %v236_v59, %v223_v29  ;;  %v240_v11 = vmul.f32 %v235_v63, %v223_v29 }
  0x9f   : > { %v819_v40 = vpop.permute.xlu1 %309  ;;  %v262_v41 = vpop.permute.xlu0 %261  ;;  %v244_v16 = vadd.f32 %v241_v2, %v215_v6  ;;  %v243_v24 = vadd.f32 %v240_v11, %v214_v15 }
  0xa0   : > { %v271_v3 = vmul.f32 %v262_v41, %v252_v31 }
  0xa2   : > { %v274_v17 = vadd.f32 %v271_v3, %v245_v7 }
  0xa3   : > { %v260_v42 = vpop.permute.xlu1 %259  ;;  %v258_v43 = vpop.permute.xlu0 %257 }
  0xa4   : > { %v265_v0 = vsel %vm263_vm3, %v260_v42, %v262_v41  ;;  %v264_v13 = vsel %vm263_vm3, %v258_v43, %v260_v42 }
  0xa5   : > { %v270_v12 = vmul.f32 %v265_v0, %v252_v31  ;;  %v269_v8 = vmul.f32 %v264_v13, %v252_v31 }
  0xa7   : > { %v821_v44 = vpop.permute.xlu1 %338  ;;  %v291_v45 = vpop.permute.xlu0 %290  ;;  %v273_v25 = vadd.f32 %v270_v12, %v244_v16  ;;  %v272_v33 = vadd.f32 %v269_v8, %v243_v24 }
  0xa8   : > { %v300_v14 = vmul.f32 %v291_v45, %v817_v36 }
  0xaa   : > { %v303_v27 = vadd.f32 %v300_v14, %v274_v17 }
  0xab   : > { %v289_v46 = vpop.permute.xlu1 %288  ;;  %v287_v47 = vpop.permute.xlu0 %286 }
  0xac   : > { %v294_v10 = vsel %vm292_vm4, %v289_v46, %v291_v45  ;;  %v293_v21 = vsel %vm292_vm4, %v287_v47, %v289_v46 }
  0xad   : > { %v299_v20 = vmul.f32 %v294_v10, %v817_v36  ;;  %v298_v31 = vmul.f32 %v293_v21, %v817_v36 }
  0xaf   : > { %v823_v48 = vpop.permute.xlu1 %367  ;;  %v320_v49 = vpop.permute.xlu0 %319  ;;  %v302_v34 = vadd.f32 %v299_v20, %v273_v25  ;;  %v301_v36 = vadd.f32 %v298_v31, %v272_v33 }
  0xb0   : > { %v329_v22 = vmul.f32 %v320_v49, %v819_v40 }
  0xb2   : > { %v332_v35 = vadd.f32 %v329_v22, %v303_v27 }
  0xb3   : > { %v318_v51 = vpop.permute.xlu1 %317  ;;  %v316_v55 = vpop.permute.xlu0 %315 }
  0xb4   : > { %v323_v18 = vsel %vm321_vm5, %v318_v51, %v320_v49  ;;  %v322_v29 = vsel %vm321_vm5, %v316_v55, %v318_v51 }
  0xb5   : > { %v328_v28 = vmul.f32 %v323_v18, %v819_v40  ;;  %v327_v39 = vmul.f32 %v322_v29, %v819_v40 }
  0xb7   : > { %v826_v60 = vpop.permute.xlu1 %396  ;;  %v349_v4 = vpop.permute.xlu0 %348  ;;  %v331_v45 = vadd.f32 %v328_v28, %v302_v34  ;;  %v330_v55 = vadd.f32 %v327_v39, %v301_v36 }
  0xb8   : > { %v358_v30 = vmul.f32 %v349_v4, %v821_v44 }
  0xba   : > { %v361_v46 = vadd.f32 %v358_v30, %v332_v35 }
  0xbb   : > { %v347_v9 = vpop.permute.xlu1 %346  ;;  %v376_v19 = vpop.permute.xlu0 %375 }
  0xbc   : > { %v352_v26 = vsel %vm350_vm6, %v347_v9, %v349_v4 }
  0xbd   : > { %v357_v37 = vmul.f32 %v352_v26, %v821_v44 }
  0xbf   : > { %v345_v23 = vpop.permute.xlu1 %344  ;;  %v374_v32 = vpop.permute.xlu0 %373  ;;  %v360_v51 = vadd.f32 %v357_v37, %v331_v45 }
  0xc0   : > { %v351_v41 = vsel %vm350_vm6, %v345_v23, %v347_v9  ;;  %v380_v49 = vsel %vm379_vm7, %v374_v32, %v376_v19 }
  0xc1   : > { %v356_v52 = vmul.f32 %v351_v41, %v821_v44  ;;  %v385_v57 = vmul.f32 %v380_v49, %v823_v48  ;;  %v420_v44 = vld [vmem:[%s874_s2] sm:$0xff] }
  0xc3   : > { %v378_v38 = vpop.permute.xlu1 %377  ;;  %v407_v50 = vpop.permute.xlu0 %406  ;;  %v359_v62 = vadd.f32 %v356_v52, %v330_v55 }
  0xc4   : > { %v381_v42 = vsel %vm379_vm7, %v376_v19, %v378_v38  ;;  %v387_v43 = vmul.f32 %v378_v38, %v823_v48  ;;  %v416_v40 = vmul.f32 %v407_v50, %v826_v60 }
  0xc5   : > { %v386_v47 = vmul.f32 %v381_v42, %v823_v48  ;;  %v388_v2 = vadd.f32 %v385_v57, %v359_v62 }
  0xc6   : > { %v390_v53 = vadd.f32 %v387_v43, %v361_v46 }
  0xc7   : > { %v405_v54 = vpop.permute.xlu1 %404  ;;  %v389_v61 = vadd.f32 %v386_v47, %v360_v51 }
  0xc8   : > { %v410_v56 = vsel %vm408_vm8, %v405_v54, %v407_v50  ;;  %v419_v58 = vadd.f32 %v416_v40, %v390_v53 }
  0xc9   : > { %v415_v59 = vmul.f32 %v410_v56, %v826_v60 }
  0xca   : > { %652 = vmatpush3.msk.msra.mxu1 %vm425_vm9, %v419_v58 }
  0xcb   : > { %v403_v63 = vpop.permute.xlu1 %402  ;;  %v418_v0 = vadd.f32 %v415_v59, %v389_v61  ;;  %654 = vmatmul.mubr.msk.f32.vlgmr.msra.gmra.mrb[0].mxu1 %vm421_vm10, %v420_v44 }
  0xcc   : > { %v409_v1 = vsel %vm408_vm8, %v403_v63, %v405_v54 }
  0xcd   : > { %v414_v48 = vmul.f32 %v409_v1, %v826_v60  ;;  %642 = vmatprep.subr.msk.mxu0 %vm425_vm9, %v418_v0 }
  0xcf   : > { %v417_v3 = vadd.f32 %v414_v48, %v388_v2 }
  0xd1   : > { %643 = vmatpush1.msk.msra.mxu0 %vm425_vm9, %v417_v3 }
  0xd2   : > { %644 = vmatmul.mubr.msk.f32.vlgmr.msra.gmra.mrb[0].mxu0 %vm421_vm10, %v420_v44 }
 0x19e   : > { %v572_v4 = vpop.f32.mrb[0].mxu1 }
 0x19f   : > { %579 = vst.msk [vmem:[%s170_s24 + $0x10] sm:$0xff] %vm578_vm11, %v572_v4  ;;  %v655_v5 = vpop.f32.mrb[1].mxu1 }
 0x1a5   : > { %v501_v6 = vpop.f32.mrb[0].mxu0 }
 0x1a6   : > { %576 = vst [vmem:[%s170_s24] sm:$0xff] %v501_v6  ;;  %v503_v7 = vpop.f32.mrb[1].mxu0 }
 0x1a7   : > { %577 = vst [vmem:[%s170_s24 + $0x8] sm:$0xff] %v503_v7 }
 0x1a8 PF: > { %s13_s12 = sadd.s32 1, %s702_s12  }
 0x1a9   : > { %p10_p4 = scmp.ge.s32.totalorder %s13_s12, 4  }
 0x1ab   :  { %12 = sbr.rel (!%p10_p4) target bundleno = 1 (0x1), region = 62 }

</bundles_post_ra>
